<compile_context>
chip_gen: v7x
topology: tpu7x:2x2x1
jax: 0.10.0
libtpu: 0.0.40
codegen_flags: <defaults>
</compile_context>

<pallas_src>
import functools

import jax
import jax.numpy as jnp
from jax.experimental import pallas as pl
from jax.experimental.pallas import tpu as pltpu


def _round_up(n, m):
    return ((n + m - 1) // m) * m


def lstm_gen_kernel(H, O, n_w1, r_w2, r_b2, r_wfc, r_bfc,
                    x_ref, slab_ref, out_ref):
    """Single-timestep 2-layer LSTM + Linear head; one packed weight slab."""

    def sigmoid(z):
        # One EUP transcendental per gate (vs exp + divide); robust for large |z|.
        return 0.5 * (jnp.tanh(0.5 * z) + 1.0)

    def gates_to_h(g):
        # Lane layout of g: [ i | g | o ] (forget gate stripped: c_prev == 0).
        # c = i * tanh(g_cell); h = o * tanh(c).
        i = sigmoid(g[:, 0:H])
        gg = jnp.tanh(g[:, H:2 * H])
        o = sigmoid(g[:, 2 * H:3 * H])
        return o * jnp.tanh(i * gg)

    x = x_ref[...]                                  # (B, n_w1) = [x | 1 | 0...]

    # ---- LSTM layer 0 (bias folded via the ones column of x_aug) ----
    g1 = jnp.dot(x, slab_ref[0:n_w1, :],
                 preferred_element_type=jnp.float32)            # (B, L)
    h1 = gates_to_h(g1)                                          # (B, H)

    # ---- LSTM layer 1 (bias row broadcast-added across the batch) ----
    g2 = (jnp.dot(h1, slab_ref[r_w2:r_w2 + H, :],
                  preferred_element_type=jnp.float32)
          + slab_ref[r_b2:r_b2 + 1, :])                          # (B, L)
    h2 = gates_to_h(g2)                                          # (B, H)

    # ---- fc head: y = h2 @ Wfc^T + bfc (only first O lanes are real) ----
    y = (jnp.dot(h2, slab_ref[r_wfc:r_wfc + H, :],
                 preferred_element_type=jnp.float32)
         + slab_ref[r_bfc:r_bfc + 1, :])                         # (B, L)
    out_ref[...] = y[:, 0:O]                                     # (B, O)


def pack_lstm_generator_params(params, hidden_size):
    """Pack all live weights/biases into one lane-128, sublane-8 padded f32 slab."""
    H = hidden_size
    I = params["w_ih_l0"].shape[1]
    O = params["w_fc"].shape[0]

    def igo(a):
        # PyTorch gate order along rows: [i | f | g | o]; drop the dead f gate.
        return jnp.concatenate([a[0:H], a[2 * H:3 * H], a[3 * H:4 * H]], axis=0)

    L = _round_up(max(3 * H, O), 128)          # lane width of the slab
    n_w1 = _round_up(I + 1, 8)                 # layer-0 weight rows (+ bias row)
    n_w2 = _round_up(H, 8)
    r_w2 = n_w1                                # layer-1 gate weights
    r_b2 = r_w2 + n_w2                         # layer-1 combined bias row
    r_wfc = r_b2 + 8                           # fc weight
    r_bfc = r_wfc + n_w2                       # fc bias row

    def pad2(a, rows, cols):
        a = a.astype(jnp.float32)
        return jnp.pad(a, ((0, rows - a.shape[0]), (0, cols - a.shape[1])))

    w1 = igo(params["w_ih_l0"]).T                                   # (I, 3H)
    b1 = igo(params["b_ih_l0"] + params["b_hh_l0"])[None, :]        # (1, 3H)
    sec_w1 = pad2(jnp.concatenate([w1, b1], axis=0), n_w1, L)

    sec_w2 = pad2(igo(params["w_ih_l1"]).T, n_w2, L)                # (H, 3H)
    sec_b2 = pad2(igo(params["b_ih_l1"] + params["b_hh_l1"])[None, :], 8, L)

    sec_wfc = pad2(params["w_fc"].T, n_w2, L)                       # (H, O)
    sec_bfc = pad2(params["b_fc"][None, :], 8, L)

    slab = jnp.concatenate([sec_w1, sec_w2, sec_b2, sec_wfc, sec_bfc], axis=0)
    meta = dict(H=H, O=O, L=L, n_w1=n_w1, r_w2=r_w2, r_b2=r_b2,
                r_wfc=r_wfc, r_bfc=r_bfc)
    return slab, meta


@functools.partial(jax.jit, static_argnums=(2,))
def lstm_generator_forward(x, params, hidden_size):
    """Wrapper: param packing in plain JAX, hot path in one Pallas kernel.

    Jitted end-to-end (hidden_size static) so a training loop sees a single
    dispatch per forward call instead of eager packing ops + a kernel launch.
    """
    slab, m = pack_lstm_generator_params(params, hidden_size)
    B, I = x.shape
    # Augment x with a ones column (folds the layer-0 bias into its matmul) and
    # zero-pad columns up to the sublane-aligned fan-in of the packed W1 block.
    x_aug = jnp.concatenate(
        [x.astype(jnp.float32),
         jnp.ones((B, 1), jnp.float32),
         jnp.zeros((B, m["n_w1"] - I - 1), jnp.float32)], axis=1)

    kernel = functools.partial(
        lstm_gen_kernel, m["H"], m["O"], m["n_w1"], m["r_w2"], m["r_b2"],
        m["r_wfc"], m["r_bfc"])
    vmem = pl.BlockSpec(memory_space=pltpu.MemorySpace.VMEM)
    return pl.pallas_call(
        kernel,
        out_shape=jax.ShapeDtypeStruct((B, m["O"]), jnp.float32),
        in_specs=[vmem, vmem],
        out_specs=vmem,
    )(x_aug, slab)


def _reference_forward(x, params, hidden_size):
    """Pure-JAX reference reproducing nn.LSTM(num_layers=2) + Linear at seq_len=1."""
    H = hidden_size

    def cell(inp, w_ih, w_hh, b_ih, b_hh):
        h0 = jnp.zeros((inp.shape[0], H), jnp.float32)
        c0 = jnp.zeros((inp.shape[0], H), jnp.float32)
        g = inp @ w_ih.T + b_ih + h0 @ w_hh.T + b_hh
        i = jax.nn.sigmoid(g[:, 0:H])
        f = jax.nn.sigmoid(g[:, H:2 * H])
        gg = jnp.tanh(g[:, 2 * H:3 * H])
        o = jax.nn.sigmoid(g[:, 3 * H:4 * H])
        c = f * c0 + i * gg
        return o * jnp.tanh(c)

    h1 = cell(x, params["w_ih_l0"], params["w_hh_l0"],
              params["b_ih_l0"], params["b_hh_l0"])
    h2 = cell(h1, params["w_ih_l1"], params["w_hh_l1"],
              params["b_ih_l1"], params["b_hh_l1"])
    return h2 @ params["w_fc"].T + params["b_fc"]


if __name__ == "__main__":
    # Small shapes consistent with the module: batch=2, input_size=4,
    # hidden_size=32, output_size=8, num_layers=2.
    B, I, H, O = 2, 4, 32, 8

    key = jax.random.PRNGKey(0)
    keys = jax.random.split(key, 11)
    k = 1.0 / jnp.sqrt(jnp.float32(H))

    def u(kk, shape):
        return jax.random.uniform(kk, shape, jnp.float32, -k, k)

    params = {
        "w_ih_l0": u(keys[0], (4 * H, I)),
        "w_hh_l0": u(keys[1], (4 * H, H)),  # unused: zero init state, seq_len=1
        "b_ih_l0": u(keys[2], (4 * H,)),
        "b_hh_l0": u(keys[3], (4 * H,)),
        "w_ih_l1": u(keys[4], (4 * H, H)),
        "w_hh_l1": u(keys[5], (4 * H, H)),  # unused: zero init state, seq_len=1
        "b_ih_l1": u(keys[6], (4 * H,)),
        "b_hh_l1": u(keys[7], (4 * H,)),
        "w_fc": u(keys[8], (O, H)),
        "b_fc": u(keys[9], (O,)),
    }
    x = jax.random.normal(keys[10], (B, I), jnp.float32)

    out = lstm_generator_forward(x, params, H)
    out = jax.block_until_ready(out)

    assert out.shape == (B, O), out.shape
    ref = _reference_forward(x, params, H)
    assert jnp.allclose(out, ref, atol=1e-5, rtol=1e-5), (
        "Pallas output diverges from pure-JAX reference")

    print("KERNEL_OK")
</pallas_src>

<mosaic_0001>
module attributes {stable_mosaic.version = 11 : i64} {
  func.func @lstm_gen_kernel(%arg0: memref<2x8xf32, #tpu.memory_space<vmem>>, %arg1: memref<88x128xf32, #tpu.memory_space<vmem>>, %arg2: memref<2x8xf32, #tpu.memory_space<vmem>>) attributes {dimension_semantics = [], scalar_prefetch = 0 : i64, scratch_operands = 0 : i64, tpu.core_type = #tpu.core_type<tc>} {
    %c0 = arith.constant 0 : index
    %c0_0 = arith.constant 0 : index
    %0 = vector.load %arg0[%c0, %c0_0] : memref<2x8xf32, #tpu.memory_space<vmem>>, vector<2x8xf32>
    %c0_1 = arith.constant 0 : index
    %c0_2 = arith.constant 0 : index
    %1 = vector.load %arg1[%c0_1, %c0_2] : memref<88x128xf32, #tpu.memory_space<vmem>>, vector<8x128xf32>
    %cst = arith.constant dense<0.000000e+00> : vector<2x128xf32>
    %2 = tpu.matmul %0, %1, %cst {dimension_numbers = #tpu.dot_dimension_numbers<[1], [0], [0], [1], [0, 0, 1, 1], [], []>} : vector<2x8xf32>, vector<8x128xf32>, vector<2x128xf32> -> vector<2x128xf32>
    %3 = vector.extract_strided_slice %2 {offsets = [0, 0], sizes = [2, 32], strides = [1, 1]} : vector<2x128xf32> to vector<2x32xf32>
    %cst_3 = arith.constant 5.000000e-01 : f32
    %4 = vector.broadcast %cst_3 : f32 to vector<2x32xf32>
    %5 = arith.mulf %4, %3 : vector<2x32xf32>
    %6 = math.tanh %5 : vector<2x32xf32>
    %cst_4 = arith.constant 1.000000e+00 : f32
    %7 = vector.broadcast %cst_4 : f32 to vector<2x32xf32>
    %8 = arith.addf %6, %7 : vector<2x32xf32>
    %cst_5 = arith.constant 5.000000e-01 : f32
    %9 = vector.broadcast %cst_5 : f32 to vector<2x32xf32>
    %10 = arith.mulf %9, %8 : vector<2x32xf32>
    %11 = vector.extract_strided_slice %2 {offsets = [0, 32], sizes = [2, 32], strides = [1, 1]} : vector<2x128xf32> to vector<2x32xf32>
    %12 = math.tanh %11 : vector<2x32xf32>
    %13 = vector.extract_strided_slice %2 {offsets = [0, 64], sizes = [2, 32], strides = [1, 1]} : vector<2x128xf32> to vector<2x32xf32>
    %cst_6 = arith.constant 5.000000e-01 : f32
    %14 = vector.broadcast %cst_6 : f32 to vector<2x32xf32>
    %15 = arith.mulf %14, %13 : vector<2x32xf32>
    %16 = math.tanh %15 : vector<2x32xf32>
    %cst_7 = arith.constant 1.000000e+00 : f32
    %17 = vector.broadcast %cst_7 : f32 to vector<2x32xf32>
    %18 = arith.addf %16, %17 : vector<2x32xf32>
    %cst_8 = arith.constant 5.000000e-01 : f32
    %19 = vector.broadcast %cst_8 : f32 to vector<2x32xf32>
    %20 = arith.mulf %19, %18 : vector<2x32xf32>
    %21 = arith.mulf %10, %12 : vector<2x32xf32>
    %22 = math.tanh %21 : vector<2x32xf32>
    %23 = arith.mulf %20, %22 : vector<2x32xf32>
    %c8 = arith.constant 8 : index
    %c0_9 = arith.constant 0 : index
    %24 = vector.load %arg1[%c8, %c0_9] : memref<88x128xf32, #tpu.memory_space<vmem>>, vector<32x128xf32>
    %cst_10 = arith.constant dense<0.000000e+00> : vector<2x128xf32>
    %25 = tpu.matmul %23, %24, %cst_10 {dimension_numbers = #tpu.dot_dimension_numbers<[1], [0], [0], [1], [0, 0, 1, 1], [], []>} : vector<2x32xf32>, vector<32x128xf32>, vector<2x128xf32> -> vector<2x128xf32>
    %c40 = arith.constant 40 : index
    %c0_11 = arith.constant 0 : index
    %26 = vector.load %arg1[%c40, %c0_11] : memref<88x128xf32, #tpu.memory_space<vmem>>, vector<1x128xf32>
    %27 = vector.broadcast %26 : vector<1x128xf32> to vector<2x128xf32>
    %28 = arith.addf %25, %27 : vector<2x128xf32>
    %29 = vector.extract_strided_slice %28 {offsets = [0, 0], sizes = [2, 32], strides = [1, 1]} : vector<2x128xf32> to vector<2x32xf32>
    %cst_12 = arith.constant 5.000000e-01 : f32
    %30 = vector.broadcast %cst_12 : f32 to vector<2x32xf32>
    %31 = arith.mulf %30, %29 : vector<2x32xf32>
    %32 = math.tanh %31 : vector<2x32xf32>
    %cst_13 = arith.constant 1.000000e+00 : f32
    %33 = vector.broadcast %cst_13 : f32 to vector<2x32xf32>
    %34 = arith.addf %32, %33 : vector<2x32xf32>
    %cst_14 = arith.constant 5.000000e-01 : f32
    %35 = vector.broadcast %cst_14 : f32 to vector<2x32xf32>
    %36 = arith.mulf %35, %34 : vector<2x32xf32>
    %37 = vector.extract_strided_slice %28 {offsets = [0, 32], sizes = [2, 32], strides = [1, 1]} : vector<2x128xf32> to vector<2x32xf32>
    %38 = math.tanh %37 : vector<2x32xf32>
    %39 = vector.extract_strided_slice %28 {offsets = [0, 64], sizes = [2, 32], strides = [1, 1]} : vector<2x128xf32> to vector<2x32xf32>
    %cst_15 = arith.constant 5.000000e-01 : f32
    %40 = vector.broadcast %cst_15 : f32 to vector<2x32xf32>
    %41 = arith.mulf %40, %39 : vector<2x32xf32>
    %42 = math.tanh %41 : vector<2x32xf32>
    %cst_16 = arith.constant 1.000000e+00 : f32
    %43 = vector.broadcast %cst_16 : f32 to vector<2x32xf32>
    %44 = arith.addf %42, %43 : vector<2x32xf32>
    %cst_17 = arith.constant 5.000000e-01 : f32
    %45 = vector.broadcast %cst_17 : f32 to vector<2x32xf32>
    %46 = arith.mulf %45, %44 : vector<2x32xf32>
    %47 = arith.mulf %36, %38 : vector<2x32xf32>
    %48 = math.tanh %47 : vector<2x32xf32>
    %49 = arith.mulf %46, %48 : vector<2x32xf32>
    %c48 = arith.constant 48 : index
    %c0_18 = arith.constant 0 : index
    %50 = vector.load %arg1[%c48, %c0_18] : memref<88x128xf32, #tpu.memory_space<vmem>>, vector<32x128xf32>
    %cst_19 = arith.constant dense<0.000000e+00> : vector<2x128xf32>
    %51 = tpu.matmul %49, %50, %cst_19 {dimension_numbers = #tpu.dot_dimension_numbers<[1], [0], [0], [1], [0, 0, 1, 1], [], []>} : vector<2x32xf32>, vector<32x128xf32>, vector<2x128xf32> -> vector<2x128xf32>
    %c80 = arith.constant 80 : index
    %c0_20 = arith.constant 0 : index
    %52 = vector.load %arg1[%c80, %c0_20] : memref<88x128xf32, #tpu.memory_space<vmem>>, vector<1x128xf32>
    %53 = vector.broadcast %52 : vector<1x128xf32> to vector<2x128xf32>
    %54 = arith.addf %51, %53 : vector<2x128xf32>
    %55 = vector.extract_strided_slice %54 {offsets = [0, 0], sizes = [2, 8], strides = [1, 1]} : vector<2x128xf32> to vector<2x8xf32>
    %c0_21 = arith.constant 0 : index
    %c0_22 = arith.constant 0 : index
    %56 = vector.load %arg2[%c0_21, %c0_22] : memref<2x8xf32, #tpu.memory_space<vmem>>, vector<2x8xf32>
    tpu.vector_store %arg2[%c0_21, %c0_22], %55 {strides = array<i32>} : memref<2x8xf32, #tpu.memory_space<vmem>>, vector<2x8xf32>,
    return
  }
}

</mosaic_0001>

<bundles_post_ra>
// kernel: lstm_generator_forward.1
= control target key start
LH: loop header
LB: loop body
LE: loop exit
PB: predicated region body
PF: predicated region fallthrough
CT: control target
= control target key end

     0   :  { %vm14_vm0 = vcmask 64512   ;;  %v403_v2 = vmov 0.0   ;;  %vm404_vm1 = vmmov 0   ;;  %s480_s0 = inlined_call_operand.vmem [shape: f32[2,8], index: 0, kind: input, shape index: {}]   ;;  %s481_s1 = inlined_call_operand.vmem [shape: f32[88,128], index: 1, kind: input, shape index: {}]   ;;  %s482_s2 = inlined_call_operand.hbm [shape: f32[2,8], index: 2, kind: output, shape index: {}]  }
   0x1   :  { %v13_v0 = vld [vmem:[%s481_s1] sm:$0xff]  ;;  %322 = vmatprep.subr.mxu0 %v403_v2  ;;  %324 = vmatprep.mubr.msk.f32.mxu0 %vm404_vm1, %v403_v2 }
   0x2   :  { %v12_v1 = vld [vmem:[%s480_s0] sm:$0x3] }
   0x3   :  { %7 = vsyncpa [#allocation3], 0  ;;  %323 = vmatpush3.msra.mxu0 %v13_v0  ;;  %335 = vmatprep.mubr.msk.f32.mxu1 %vm404_vm1, %v403_v2  ;;  %s405_s13 = smov 96   ;;  %v104_v12 = vld [vmem:[%s481_s1 + $0x8] sm:$0xff]  ;;  %v105_v13 = vld [vmem:[%s481_s1 + $0x10] sm:$0xff]  ;;  %v406_v15 = vmov 0.0|0.0  }
   0x4   :  { %325 = vmatmul.mubr.msk.f32.vlgmr.msra.gmra.mrb[0].mxu0 %vm14_vm0, %v12_v1  ;;  %v106_v14 = vld [vmem:[%s481_s1 + $0x18] sm:$0xff]  ;;  %349 = vmatprep.subr.bf16.mxu1 %v406_v15  ;;  %v350_v16 = vpack.c.bf16 %v105_v13, %v104_v12  ;;  %v107_v17 = vld [vmem:[%s481_s1 + $0x20] sm:$0xff]  ;;  %s407_s21 = smov 64   ;;  %vm116_vm2 = vcmask 261120   ;;  %v306_v23 = vld [vmem:[%s481_s1 + $0x28] ss:$0 sm:$0xff] }
   0x5   :  { %346 = vmatprep.mubr.msk.f32.mxu0 %vm404_vm1, %v403_v2  ;;  %355 = vmatprep.subr.bf16.mxu0 %v406_v15  ;;  %v353_v18 = vpack.c.bf16 %v107_v17, %v106_v14  ;;  %v205_v34 = vld [vmem:[%s481_s1 + $0x30] sm:$0xff]  ;;  %v206_v35 = vld [vmem:[%s481_s1 + $0x38] sm:$0xff]  ;;  %v207_v36 = vld [vmem:[%s481_s1 + $0x40] sm:$0xff]  ;;  %s408_s6 = smov [#allocation2]   ;;  %vm289_vm3 = vcmask 58368  }
   0x6   :  { %351 = vmatpush3.bf16.msra.mxu1 %v350_v16  ;;  %v356_v37 = vpack.c.bf16 %v206_v35, %v205_v34  ;;  %v208_v38 = vld [vmem:[%s481_s1 + $0x48] sm:$0xff]  ;;  %v308_v44 = vld [vmem:[%s481_s1 + $0x50] ss:$0 sm:$0xff]  ;;  %s297_s7 = sshll.u32 %s408_s6, 4  ;;  %s298_s7 = int_to_ptr.vmem [resolvable:$true] %s297_s7 }
   0x7   :  { %352 = vmatprep.subr.bf16.mxu1 %v406_v15  ;;  %v359_v39 = vpack.c.bf16 %v208_v38, %v207_v36  ;;  %s379_s8 = scalar_lea.vmem %s298_s7, 32  ;;  %p384_p1 = scmp.lt.s32.totalorder %s298_s7, %s298_s7 }
   0x8   :  { %357 = vmatpush3.bf16.msra.mxu0 %v356_v37  ;;  %p380_p0 = scmp.ne.s32.totalorder %s298_s7, %s379_s8  ;;  %p385_p2 = scmp.lt.s32.totalorder %s379_s8, %s379_s8 }
   0x9   :  { %358 = vmatprep.subr.bf16.mxu0 %v406_v15 }
   0xa   :  { %354 = vmatpush3.bf16.msra.mxu1 %v353_v18  ;;  %p386_p3 = por %p385_p2, %p384_p1 }
   0xc   :  { %360 = vmatpush3.bf16.msra.mxu0 %v359_v39  ;;  %p387_p4 = pnand %p386_p3, %p380_p0 }
  0xd7   :  { %v84_v3 = vpop.f32.mrb[0].mxu0 }
  0xd8   :  { %367 = vtanh.f32 %v84_v3  ;;  %v326_v4 = vpop.f32.mrb[1].mxu0  ;;  %v88_v6 = vmul.f32 0.5, %v84_v3 }
  0xda   :  { %369 = vtanh.f32 %v88_v6 }
  0xe2   :  { %v368_v5 = vpop.eup %367 }
  0xe3   :  { %94 = vrot.lane.b32.xlu0 %v368_v5, %s405_s13 }
  0xe4   :  { %v370_v7 = vpop.eup %369 }
  0xe5   :  { %v90_v8 = vadd.f32 1.0, %v370_v7 }
  0xe7   :  { %v91_v9 = vmul.f32 0.5, %v90_v8 }
 0x155   :  { %v95_v10 = vpop.permute.xlu0 %94 }
 0x156   :  { %v97_v11 = vmul.f32 %v95_v10, %v91_v9 }
 0x158   :  { %371 = vtanh.f32 %v97_v11 }
 0x162   :  { %v372_v19 = vpop.eup %371 }
 0x163   :  { %100 = vrot.lane.b32.xlu0 %v372_v19, %s407_s21 }
 0x1d5   :  { %v101_v20 = vpop.permute.xlu0 %100 }
 0x1d6   :  { %v103_v21 = vmul.f32 %v101_v20, %v91_v9 }
 0x1d8   :  { %114 = vrot.lane.b32.xlu1 %v103_v21, %s407_s21 }
 0x24a   :  { %v115_v22 = vpop.permute.xlu1 %114 }
 0x24b   :  { %336 = vmatmul.mubr.msk.f32.vlgmr.msra.gmra.mrb[0].mxu1 %vm116_vm2, %v115_v22 }
 0x31e   :  { %v185_v24 = vpop.f32.mrb[0].mxu1 }
 0x31f   :  { %v186_v25 = vadd.f32 %v306_v23, %v185_v24  ;;  %v337_v26 = vpop.f32.mrb[1].mxu1 }
 0x321   :  { %373 = vtanh.f32 %v186_v25  ;;  %v189_v28 = vmul.f32 0.5, %v186_v25 }
 0x323   :  { %375 = vtanh.f32 %v189_v28 }
 0x32b   :  { %v374_v27 = vpop.eup %373 }
 0x32c   :  { %195 = vrot.lane.b32.xlu1 %v374_v27, %s405_s13 }
 0x32d   :  { %v376_v29 = vpop.eup %375 }
 0x32e   :  { %v191_v30 = vadd.f32 1.0, %v376_v29 }
 0x330   :  { %v192_v31 = vmul.f32 0.5, %v191_v30 }
 0x39e   :  { %v196_v32 = vpop.permute.xlu1 %195 }
 0x39f   :  { %v198_v33 = vmul.f32 %v196_v32, %v192_v31 }
 0x3a1   :  { %377 = vtanh.f32 %v198_v33 }
 0x3ab   :  { %v378_v40 = vpop.eup %377 }
 0x3ac   :  { %201 = vrot.lane.b32.xlu0 %v378_v40, %s407_s21 }
 0x41e   :  { %v202_v41 = vpop.permute.xlu0 %201 }
 0x41f   :  { %v204_v42 = vmul.f32 %v202_v41, %v192_v31 }
 0x421   :  { %215 = vrot.lane.b32.xlu1 %v204_v42, %s407_s21 }
 0x493   :  { %v216_v43 = vpop.permute.xlu1 %215 }
 0x494   :  { %347 = vmatmul.mubr.msk.f32.vlgmr.msra.gmra.mrb[2].mxu0 %vm116_vm2, %v216_v43 }
 0x567   :  { %v285_v45 = vpop.f32.mrb[2].mxu0 }
 0x568   :  { %v286_v46 = vadd.f32 %v308_v44, %v285_v45  ;;  %v348_v47 = vpop.f32.mrb[3].mxu0 }
 0x56a   :  { %290 = vst.msk [vmem:[#allocation2] sm:$0x3] %vm289_vm3, %v286_v46 }
 0x56b   :  { %390 = shalt.err (!%p387_p4)
}
 0x56c   :  { %s391_s11 = scalar_lea.hbm %s482_s2, 32 }
 0x56d   :  { %p392_p5 = scmp.ne.s32.totalorder %s482_s2, %s391_s11  ;;  %p395_p6 = scmp.lt.u32.totalorder %s391_s11, %s482_s2 }
 0x56f   :  { %p397_p7 = pnand %p395_p6, %p392_p5 }
 0x571   :  { %400 = shalt.err (!%p397_p7)
}
 0x572   :  { %300 = dma.vmem_to_hbm [thread:$0]  %s298_s7, 32, %s482_s2, [#allocation3]  }
 0x573   :  { %401 = dma.done.wait [#allocation3], 32  }
 0x574   :  { %402 = vsyncadd [#allocation3], 4294967264 }
 0x575   :  { %304 = vsyncpa [#allocation3], 1 }

</bundles_post_ra>
